<compile_context>
chip_gen: v6e
topology: v6e:2x2x1
jax: 0.10.0
libtpu: 0.0.40
codegen_flags: <defaults>
</compile_context>

<pallas_src>
import numpy as np
import jax
import jax.numpy as jnp
from jax import lax
from jax.experimental import pallas as pl
from jax.experimental.pallas import tpu as pltpu


# ----------------------------------------------------------------------------
# Kernel 1: WL message passing  counts = A @ H  (+ fused row sum-of-squares)
# Grid: (rows/tm, colors/tc, nodes/tk); k (contraction) is the last axis.
# ----------------------------------------------------------------------------
def _mm_sq_kernel(a_ref, b_ref, o_ref, sq_ref, acc_ref):
    j = pl.program_id(1)
    k = pl.program_id(2)

    @pl.when((j == 0) & (k == 0))
    def _():
        sq_ref[...] = jnp.zeros_like(sq_ref)

    @pl.when(k == 0)
    def _():
        acc_ref[...] = jnp.zeros_like(acc_ref)

    acc_ref[...] += jnp.dot(a_ref[...], b_ref[...],
                            preferred_element_type=jnp.float32)

    @pl.when(k == pl.num_programs(2) - 1)
    def _():
        acc = acc_ref[...]
        o_ref[...] = acc.astype(o_ref.dtype)
        # partial row sum-of-squares for this color tile; accumulates across j
        sq_ref[...] += jnp.sum(acc * acc, axis=1, keepdims=True)


def wl_counts_matmul(a, h, *, tm, tc, tk, out_dtype, vmem_limit):
    m, k = a.shape
    k2, c = h.shape
    assert k == k2 and m % tm == 0 and c % tc == 0 and k % tk == 0
    cost = pl.CostEstimate(
        flops=2 * m * c * k,
        transcendentals=0,
        bytes_accessed=(m * k + k * c) * a.dtype.itemsize
                       + m * c * jnp.dtype(out_dtype).itemsize + m * 128 * 4)
    return pl.pallas_call(
        _mm_sq_kernel,
        out_shape=(jax.ShapeDtypeStruct((m, c), out_dtype),
                   jax.ShapeDtypeStruct((m, 128), jnp.float32)),
        grid_spec=pltpu.PrefetchScalarGridSpec(
            num_scalar_prefetch=0,
            grid=(m // tm, c // tc, k // tk),
            in_specs=[pl.BlockSpec((tm, tk), lambda i, j, kk: (i, kk)),
                      pl.BlockSpec((tk, tc), lambda i, j, kk: (kk, j))],
            out_specs=[pl.BlockSpec((tm, tc), lambda i, j, kk: (i, j)),
                       pl.BlockSpec((tm, 128), lambda i, j, kk: (i, 0))],
            scratch_shapes=[pltpu.VMEM((tm, tc), jnp.float32)]),
        compiler_params=pltpu.CompilerParams(
            dimension_semantics=("parallel", "arbitrary", "arbitrary"),
            vmem_limit_bytes=vmem_limit),
        cost_estimate=cost,
    )(a, h)


# ----------------------------------------------------------------------------
# Kernel 2: Gram (counts @ counts.T) + fused exact multiset comparison +
#           fused per-row FIRST-MATCH reduction (min over j of first matching
#           column).  Output is only (n_pad, 128) int32 — no N^2 HBM traffic.
# ----------------------------------------------------------------------------
def gram_first_match(counts, counts_t, sq_col, sq_row, col_col, col_row,
                     *, tm, tn, tk, vmem_limit):
    m, c = counts.shape
    n_pad = m
    assert m % tm == 0 and m % tn == 0 and c % tk == 0

    def kernel(a_ref, bt_ref, sqi_ref, sqj_ref, ci_ref, cj_ref,
               rep_ref, acc_ref):
        j = pl.program_id(1)
        k = pl.program_id(2)

        @pl.when((j == 0) & (k == 0))
        def _():
            rep_ref[...] = jnp.full_like(rep_ref, n_pad)   # sentinel: no match

        @pl.when(k == 0)
        def _():
            acc_ref[...] = jnp.zeros_like(acc_ref)

        acc_ref[...] += jnp.dot(a_ref[...], bt_ref[...],
                                preferred_element_type=jnp.float32)

        @pl.when(k == pl.num_programs(2) - 1)
        def _():
            # ||c_i - c_j||^2 == 0  <=>  identical neighbor-color multisets.
            dist2 = sqi_ref[...] + sqj_ref[...] - 2.0 * acc_ref[...]
            same = (dist2 < 0.5) & (ci_ref[...] == cj_ref[...])
            col = j * tn + lax.broadcasted_iota(jnp.int32, same.shape, 1)
            cand = jnp.where(same, col, jnp.int32(n_pad))
            tile_min = jnp.min(cand, axis=1, keepdims=True)    # (tm, 1)
            rep_ref[...] = jnp.minimum(rep_ref[...], tile_min)

    cost = pl.CostEstimate(
        flops=2 * m * m * c,
        transcendentals=0,
        bytes_accessed=2 * m * c * counts.dtype.itemsize + m * 128 * 4)
    return pl.pallas_call(
        kernel,
        out_shape=jax.ShapeDtypeStruct((m, 128), jnp.int32),
        grid_spec=pltpu.PrefetchScalarGridSpec(
            num_scalar_prefetch=0,
            grid=(m // tm, m // tn, c // tk),
            in_specs=[
                pl.BlockSpec((tm, tk), lambda i, j, kk: (i, kk)),   # counts
                pl.BlockSpec((tk, tn), lambda i, j, kk: (kk, j)),   # counts.T
                pl.BlockSpec((tm, 1), lambda i, j, kk: (i, 0)),     # sq_i
                pl.BlockSpec((1, tn), lambda i, j, kk: (0, j)),     # sq_j
                pl.BlockSpec((tm, 1), lambda i, j, kk: (i, 0)),     # colors_i
                pl.BlockSpec((1, tn), lambda i, j, kk: (0, j)),     # colors_j
            ],
            out_specs=pl.BlockSpec((tm, 128), lambda i, j, kk: (i, 0)),
            scratch_shapes=[pltpu.VMEM((tm, tn), jnp.float32)]),
        compiler_params=pltpu.CompilerParams(
            dimension_semantics=("parallel", "arbitrary", "arbitrary"),
            vmem_limit_bytes=vmem_limit),
        cost_estimate=cost,
    )(counts, counts_t, sq_col, sq_row, col_col, col_row)


# ----------------------------------------------------------------------------
# Tiling helper: pad a dim to 128 and pick the largest tile <= cap dividing it.
# ----------------------------------------------------------------------------
def _pad_and_tile(dim, cap):
    d = max(128, ((dim + 127) // 128) * 128)
    if d <= cap:
        return d, d
    d = ((dim + cap - 1) // cap) * cap
    return d, cap


# ----------------------------------------------------------------------------
# WLConvMultiFeature forward
# ----------------------------------------------------------------------------
def wl_conv_multi_feature(x, edge_index):
    """x: (num_nodes, num_features); edge_index: (2, num_edges) with
    edge_index[0]=src, edge_index[1]=dst.  Returns (num_nodes,) int32 labels
    (torch.long in the reference; int32 here since x64 is off)."""
    x_np = np.asarray(x)
    ei = np.asarray(edge_index)
    n = int(x_np.shape[0])
    src, dst = ei[0], ei[1]

    # Glue: exact equality classes ("colors") of feature rows (== tuple equality).
    _, colors_np = np.unique(x_np, axis=0, return_inverse=True)
    colors_np = np.asarray(colors_np).reshape(-1).astype(np.int32)
    num_colors = int(colors_np.max()) + 1 if n > 0 else 1
    colors = jnp.asarray(colors_np)

    n_pad, t_n = _pad_and_tile(n, cap=1024)          # row / Gram tile
    c_pad, t_c = _pad_and_tile(num_colors, cap=512)  # color tile

    # dtype guards: A/H are exact in bf16 unless a single (dst,src) pair repeats
    # > 256 times; counts promote to f32 only when max in-degree > 256.
    if dst.size:
        max_in_deg = int(np.bincount(dst, minlength=n).max())
        _, pair_mult = np.unique(dst.astype(np.int64) * max(n, 1)
                                 + src.astype(np.int64), return_counts=True)
        max_pair_mult = int(pair_mult.max())
    else:
        max_in_deg, max_pair_mult = 0, 0
    adj_dtype = jnp.bfloat16 if max_pair_mult <= 256 else jnp.float32
    counts_dtype = jnp.bfloat16 if max_in_deg <= 256 else jnp.float32
    # NOTE: exact-zero dist2 test requires sq_i < 2^24, i.e. in-degree <= 4096.
    # TODO(synk): integer-exact Gram path for pathological in-degree > 4096.

    # Dense adjacency (dst-major, keeps edge multiplicities) and one-hot colors,
    # both built directly in the compute dtype (no f32 intermediate).
    a_mat = (jnp.zeros((n_pad, n_pad), adj_dtype)
             .at[dst, src].add(jnp.ones((), adj_dtype)))
    h_mat = (jnp.zeros((n_pad, c_pad), adj_dtype)
             .at[jnp.arange(n), colors].set(jnp.ones((), adj_dtype)))

    vmem_limit = 32 * 1024 * 1024

    # --- Pallas hot path #1: WL message passing + fused row sq-norms ---------
    counts, sq_full = wl_counts_matmul(a_mat, h_mat, tm=t_n, tc=t_c, tk=t_n,
                                       out_dtype=counts_dtype,
                                       vmem_limit=vmem_limit)

    counts_t = counts.T                              # one N*C transpose copy
    sq_col = sq_full[:, :1]                          # (n_pad, 1)
    sq_row = sq_full[:, 0].reshape(1, n_pad)         # (1, n_pad)
    colors_col = jnp.full((n_pad, 1), -1, jnp.int32).at[:n, 0].set(colors)
    colors_row = colors_col.reshape(1, n_pad)

    # --- Pallas hot path #2: Gram + exact multiset compare + first-match -----
    rep_full = gram_first_match(counts, counts_t, sq_col, sq_row,
                                colors_col, colors_row,
                                tm=t_n, tn=t_n, tk=t_c, vmem_limit=vmem_limit)

    # First-occurrence relabeling == dict insertion order of the reference.
    # TODO(synk): the Python dict/hash() compaction is inherently sequential and
    # data-dependent; replaced by exact first-occurrence ranking (same
    # semantics, no hash collisions) in O(N) JAX glue.
    rep = rep_full[:n, 0]
    idx = jnp.arange(n, dtype=rep.dtype)
    is_first = (rep == idx).astype(jnp.int32)
    labels = (jnp.cumsum(is_first) - is_first)[rep]  # exclusive prefix-sum rank
    return labels.astype(jnp.int32)


# ----------------------------------------------------------------------------
# Pure-Python reference (mirrors the PyTorch module, no torch dependency)
# ----------------------------------------------------------------------------
def _wl_reference(x_np, edge_index_np):
    n = x_np.shape[0]
    xs = [tuple(row.tolist()) for row in x_np]
    nbrs = [[] for _ in range(n)]
    for s, d in zip(edge_index_np[0].tolist(), edge_index_np[1].tolist()):
        nbrs[d].append(xs[s])
    hashmap, out = {}, []
    for node, neigh in zip(xs, nbrs):
        key = (node, tuple(sorted(neigh)))
        if key not in hashmap:
            hashmap[key] = len(hashmap)
        out.append(hashmap[key])
    return np.asarray(out, dtype=np.int64)


if __name__ == "__main__":
    key = jax.random.PRNGKey(0)
    k1, k2 = jax.random.split(key)
    num_nodes, num_features, num_edges = 16, 4, 40

    # Discrete node features (typical for WL refinement) + random directed edges.
    x = jax.random.randint(k1, (num_nodes, num_features), 0, 3, dtype=jnp.int32)
    edge_index = jax.random.randint(k2, (2, num_edges), 0, num_nodes,
                                    dtype=jnp.int32)

    labels = wl_conv_multi_feature(x, edge_index)
    labels = jax.block_until_ready(labels)

    ref = _wl_reference(np.asarray(x), np.asarray(edge_index))
    assert np.array_equal(np.asarray(labels, dtype=np.int64), ref), (labels, ref)
    print("KERNEL_OK")
</pallas_src>

<mosaic_0001>
module attributes {stable_mosaic.version = 11 : i64} {
  func.func @_mm_sq_kernel(%arg0: i32, %arg1: i32, %arg2: i32, %arg3: memref<128x128xbf16, #tpu.memory_space<vmem>>, %arg4: memref<128x128xbf16, #tpu.memory_space<vmem>>, %arg5: memref<128x128xbf16, #tpu.memory_space<vmem>>, %arg6: memref<128x128xf32, #tpu.memory_space<vmem>>, %arg7: memref<128x128xf32, #tpu.memory_space<vmem>>) attributes {dimension_semantics = [#tpu.dimension_semantics<parallel>, #tpu.dimension_semantics<arbitrary>, #tpu.dimension_semantics<arbitrary>], iteration_bounds = array<i64: 1, 1, 1>, scalar_prefetch = 0 : i64, scratch_operands = 1 : i64, tpu.core_type = #tpu.core_type<tc>, window_params = [{transform_indices = @transform_0, window_bounds = array<i64: 128, 128>}, {transform_indices = @transform_1, window_bounds = array<i64: 128, 128>}, {transform_indices = @transform_2, window_bounds = array<i64: 128, 128>}, {transform_indices = @transform_3, window_bounds = array<i64: 128, 128>}]} {
    %c0_i32 = arith.constant 0 : i32
    %0 = arith.cmpi eq, %arg1, %c0_i32 : i32
    %c0_i32_0 = arith.constant 0 : i32
    %1 = arith.cmpi eq, %arg2, %c0_i32_0 : i32
    %2 = arith.andi %0, %1 : i1
    %3 = arith.extui %2 : i1 to i32
    %c0_i32_1 = arith.constant 0 : i32
    %4 = arith.cmpi ne, %3, %c0_i32_1 : i32
    scf.if %4 {
      %cst_13 = arith.constant 0.000000e+00 : f32
      %17 = vector.broadcast %cst_13 : f32 to vector<128x128xf32>
      %c0_14 = arith.constant 0 : index
      %c0_15 = arith.constant 0 : index
      %18 = vector.load %arg6[%c0_14, %c0_15] : memref<128x128xf32, #tpu.memory_space<vmem>>, vector<128x128xf32>
      tpu.vector_store %arg6[%c0_14, %c0_15], %17 {strides = array<i32>} : memref<128x128xf32, #tpu.memory_space<vmem>>, vector<128x128xf32>,
    } else {
    }
    %c0_i32_2 = arith.constant 0 : i32
    %5 = arith.cmpi eq, %arg2, %c0_i32_2 : i32
    %6 = arith.extui %5 : i1 to i32
    %c0_i32_3 = arith.constant 0 : i32
    %7 = arith.cmpi ne, %6, %c0_i32_3 : i32
    scf.if %7 {
      %cst_13 = arith.constant 0.000000e+00 : f32
      %17 = vector.broadcast %cst_13 : f32 to vector<128x128xf32>
      %c0_14 = arith.constant 0 : index
      %c0_15 = arith.constant 0 : index
      %18 = vector.load %arg7[%c0_14, %c0_15] : memref<128x128xf32, #tpu.memory_space<vmem>>, vector<128x128xf32>
      tpu.vector_store %arg7[%c0_14, %c0_15], %17 {strides = array<i32>} : memref<128x128xf32, #tpu.memory_space<vmem>>, vector<128x128xf32>,
    } else {
    }
    %c0 = arith.constant 0 : index
    %c0_4 = arith.constant 0 : index
    %8 = vector.load %arg7[%c0, %c0_4] : memref<128x128xf32, #tpu.memory_space<vmem>>, vector<128x128xf32>
    %c0_5 = arith.constant 0 : index
    %c0_6 = arith.constant 0 : index
    %9 = vector.load %arg3[%c0_5, %c0_6] : memref<128x128xbf16, #tpu.memory_space<vmem>>, vector<128x128xbf16>
    %c0_7 = arith.constant 0 : index
    %c0_8 = arith.constant 0 : index
    %10 = vector.load %arg4[%c0_7, %c0_8] : memref<128x128xbf16, #tpu.memory_space<vmem>>, vector<128x128xbf16>
    %cst = arith.constant dense<0.000000e+00> : vector<128x128xf32>
    %11 = tpu.matmul %9, %10, %cst {dimension_numbers = #tpu.dot_dimension_numbers<[1], [0], [0], [1], [0, 0, 1, 1], [], []>} : vector<128x128xbf16>, vector<128x128xbf16>, vector<128x128xf32> -> vector<128x128xf32>
    %12 = arith.addf %8, %11 : vector<128x128xf32>
    %c0_9 = arith.constant 0 : index
    %c0_10 = arith.constant 0 : index
    %13 = vector.load %arg7[%c0_9, %c0_10] : memref<128x128xf32, #tpu.memory_space<vmem>>, vector<128x128xf32>
    tpu.vector_store %arg7[%c0_9, %c0_10], %12 {strides = array<i32>} : memref<128x128xf32, #tpu.memory_space<vmem>>, vector<128x128xf32>,
    %c0_i32_11 = arith.constant 0 : i32
    %14 = arith.cmpi eq, %arg2, %c0_i32_11 : i32
    %15 = arith.extui %14 : i1 to i32
    %c0_i32_12 = arith.constant 0 : i32
    %16 = arith.cmpi ne, %15, %c0_i32_12 : i32
    scf.if %16 {
      %c0_13 = arith.constant 0 : index
      %c0_14 = arith.constant 0 : index
      %17 = vector.load %arg7[%c0_13, %c0_14] : memref<128x128xf32, #tpu.memory_space<vmem>>, vector<128x128xf32>
      %18 = arith.truncf %17 : vector<128x128xf32> to vector<128x128xbf16>
      %c0_15 = arith.constant 0 : index
      %c0_16 = arith.constant 0 : index
      %19 = vector.load %arg5[%c0_15, %c0_16] : memref<128x128xbf16, #tpu.memory_space<vmem>>, vector<128x128xbf16>
      tpu.vector_store %arg5[%c0_15, %c0_16], %18 {strides = array<i32>} : memref<128x128xbf16, #tpu.memory_space<vmem>>, vector<128x128xbf16>,
      %c0_17 = arith.constant 0 : index
      %c0_18 = arith.constant 0 : index
      %20 = vector.load %arg6[%c0_17, %c0_18] : memref<128x128xf32, #tpu.memory_space<vmem>>, vector<128x128xf32>
      %21 = arith.mulf %17, %17 : vector<128x128xf32>
      %cst_19 = arith.constant dense<0.000000e+00> : vector<128xf32>
      %22 = vector.multi_reduction <add>, %21, %cst_19 [1] : vector<128x128xf32> to vector<128xf32>
      %23 = vector.shape_cast %22 : vector<128xf32> to vector<128x1xf32>
      %24 = vector.broadcast %23 : vector<128x1xf32> to vector<128x128xf32>
      %25 = arith.addf %20, %24 : vector<128x128xf32>
      %c0_20 = arith.constant 0 : index
      %c0_21 = arith.constant 0 : index
      %26 = vector.load %arg6[%c0_20, %c0_21] : memref<128x128xf32, #tpu.memory_space<vmem>>, vector<128x128xf32>
      tpu.vector_store %arg6[%c0_20, %c0_21], %25 {strides = array<i32>} : memref<128x128xf32, #tpu.memory_space<vmem>>, vector<128x128xf32>,
    } else {
    }
    return
  }
  func.func @transform_0(%arg0: i32, %arg1: i32, %arg2: i32) -> (i32, i32) {
    %c0_i32 = arith.constant 0 : i32
    return %arg0, %arg2 : i32, i32
  }
  func.func @transform_1(%arg0: i32, %arg1: i32, %arg2: i32) -> (i32, i32) {
    %c0_i32 = arith.constant 0 : i32
    return %arg2, %arg1 : i32, i32
  }
  func.func @transform_2(%arg0: i32, %arg1: i32, %arg2: i32) -> (i32, i32) {
    %c0_i32 = arith.constant 0 : i32
    return %arg0, %arg1 : i32, i32
  }
  func.func @transform_3(%arg0: i32, %arg1: i32, %arg2: i32) -> (i32, i32) {
    %c0_i32 = arith.constant 0 : i32
    %c0_i32_0 = arith.constant 0 : i32
    return %arg0, %c0_i32 : i32, i32
  }
}

</mosaic_0001>

<bundles_post_ra>
// kernel: tpu_custom_call.1
= control target key start
LH: loop header
LB: loop body
LE: loop exit
PB: predicated region body
PF: predicated region fallthrough
CT: control target
= control target key end

     0   :  { %9 = vsyncpa [#allocation4], 0  ;;  %s908_s0 = inlined_call_operand.hbm [shape: bf16[128,128], index: 0, kind: input, shape index: {}]   ;;  %s909_s1 = inlined_call_operand.hbm [shape: bf16[128,128], index: 1, kind: input, shape index: {}]   ;;  %s910_s2 = inlined_call_operand.hbm [shape: bf16[128,128], index: 2, kind: output, shape index: {0}]   ;;  %s911_s3 = inlined_call_operand.hbm [shape: f32[128,128], index: 3, kind: output, shape index: {1}]  }
   0x1   :  { %10 = vsyncpa [#allocation7], 0 }
   0x2   :  { %11 = vsyncpa [#allocation5], 0 }
   0x3   :  { %12 = vsyncpa [#allocation10], 0  ;;  %s859_s12 = smov [#allocation3]  }
   0x4   :  { %s18_s13 = sshll.u32 %s859_s12, 4  ;;  %s19_s13 = int_to_ptr.vmem [resolvable:$true] %s18_s13 }
   0x5   :  { %s779_s14 = scalar_lea.vmem %s19_s13, 1024  ;;  %p784_p1 = scmp.lt.s32.totalorder %s19_s13, %s19_s13 }
   0x6   :  { %p780_p0 = scmp.ne.s32.totalorder %s19_s13, %s779_s14  ;;  %p785_p2 = scmp.lt.s32.totalorder %s779_s14, %s779_s14 }
   0x8   :  { %p786_p3 = por %p785_p2, %p784_p1 }
   0xa   :  { %p787_p4 = pnand %p786_p3, %p780_p0 }
   0xc   :  { %790 = shalt.err (!%p787_p4)
}
   0xd   :  { %s860_s15 = smov 64   ;;  %s861_s16 = smov 4  }
   0xe   :  { %24 = dma.hbm_to_vmem [thread:$0]  %s908_s0, 1024, %s19_s13, [#allocation4], %s860_s15, %s860_s15, %s861_s16  }
   0xf   :  { %s862_s19 = smov [#allocation6]  }
  0x10   :  { %s30_s20 = sshll.u32 %s862_s19, 4  ;;  %s31_s20 = int_to_ptr.vmem [resolvable:$true] %s30_s20 }
  0x11   :  { %s799_s21 = scalar_lea.vmem %s31_s20, 1024  ;;  %p804_p6 = scmp.lt.s32.totalorder %s31_s20, %s31_s20 }
  0x12   :  { %p800_p5 = scmp.ne.s32.totalorder %s31_s20, %s799_s21  ;;  %p805_p7 = scmp.lt.s32.totalorder %s799_s21, %s799_s21 }
  0x14   :  { %p806_p8 = por %p805_p7, %p804_p6 }
  0x16   :  { %p807_p9 = pnand %p806_p8, %p800_p5 }
  0x18   :  { %810 = shalt.err (!%p807_p9)
}
  0x19   :  { %36 = dma.hbm_to_vmem [thread:$0]  %s909_s1, 1024, %s31_s20, [#allocation7], %s860_s15, %s860_s15, %s861_s16  }
  0x1a   :  { %851 = dma.done.wait [#allocation4], 1024  }
  0x1b   :  { %852 = vsyncadd [#allocation4], 4294966272 }
  0x1c   :  { %853 = dma.done.wait [#allocation7], 1024  }
  0x1d   :  { %854 = vsyncadd [#allocation7], 4294966272  ;;  %v755_v0 = vld [vmem:[#allocation6 + $0x38] sm:$0xff]   ;;  %v756_v1 = vld [vmem:[#allocation6 + $0x30] sm:$0xff]   ;;  %s863_s0 = smov [#allocation8]  }
  0x1e   :  { %698 = vmatprep.subr.bf16.mxu0 %v755_v0  ;;  %730 = vmatprep.subr.bf16.mxu1 %v755_v0  ;;  %v757_v2 = vld [vmem:[#allocation6 + $0x28] sm:$0xff]   ;;  %v758_v3 = vld [vmem:[#allocation6 + $0x20] sm:$0xff]   ;;  %v759_v6 = vld [vmem:[#allocation6 + $0x18] sm:$0xff]   ;;  %s558_s1 = sshll.u32 %s863_s0, 4  ;;  %s559_s1 = int_to_ptr.vmem [resolvable:$true] %s558_s1 }
  0x1f   :  { %699 = vmatpush3.bf16.msra.mxu0 %v755_v0  ;;  %738 = vmatpush3.bf16.msra.mxu1 %v755_v0  ;;  %v763_v4 = vld [vmem:[#allocation3] sm:$0xff]   ;;  %v760_v7 = vld [vmem:[#allocation6 + $0x10] sm:$0xff]   ;;  %v761_v8 = vld [vmem:[#allocation6 + $0x8] sm:$0xff]   ;;  %s811_s24 = scalar_lea.vmem %s559_s1, 1024  ;;  %p816_p11 = scmp.lt.s32.totalorder %s559_s1, %s559_s1 }
  0x20   :  { %700 = vmatprep.subr.bf16.mxu0 %v756_v1  ;;  %731 = vmatprep.subr.bf16.mxu1 %v756_v1  ;;  %v764_v5 = vld [vmem:[#allocation3 + $0x20] sm:$0xff]   ;;  %v765_v10 = vld [vmem:[#allocation3 + $0x8] sm:$0xff]   ;;  %v767_v12 = vld [vmem:[#allocation3 + $0x10] sm:$0xff]   ;;  %p812_p10 = scmp.ne.s32.totalorder %s559_s1, %s811_s24  ;;  %p817_p12 = scmp.lt.s32.totalorder %s811_s24, %s811_s24 }
  0x21   :  { %714 = vmatprep.mubr.bf16.mxu0 %v763_v4  ;;  %722 = vmatprep.mubr.bf16.mxu1 %v764_v5  ;;  %v762_v9 = vld [vmem:[#allocation6] sm:$0xff]   ;;  %v766_v11 = vld [vmem:[#allocation3 + $0x28] sm:$0xff]   ;;  %v769_v13 = vld [vmem:[#allocation3 + $0x30] sm:$0xff]  }
  0x22   :  { %v768_v14 = vld [vmem:[#allocation3 + $0x18] sm:$0xff]   ;;  %p818_p13 = por %p817_p12, %p816_p11 }
  0x23   :  { %701 = vmatpush3.bf16.msra.mxu0 %v756_v1  ;;  %739 = vmatpush3.bf16.msra.mxu1 %v756_v1  ;;  %v770_v15 = vld [vmem:[#allocation3 + $0x38] sm:$0xff]  }
  0x24   :  { %702 = vmatprep.subr.bf16.mxu0 %v757_v2  ;;  %732 = vmatprep.subr.bf16.mxu1 %v757_v2  ;;  %p819_p0 = pnand %p818_p13, %p812_p10 }
  0x27   :  { %703 = vmatpush3.bf16.msra.mxu0 %v757_v2  ;;  %740 = vmatpush3.bf16.msra.mxu1 %v757_v2 }
  0x28   :  { %704 = vmatprep.subr.bf16.mxu0 %v758_v3  ;;  %733 = vmatprep.subr.bf16.mxu1 %v758_v3 }
  0x2b   :  { %705 = vmatpush3.bf16.msra.mxu0 %v758_v3  ;;  %741 = vmatpush3.bf16.msra.mxu1 %v758_v3 }
  0x2c   :  { %706 = vmatprep.subr.bf16.mxu0 %v759_v6  ;;  %734 = vmatprep.subr.bf16.mxu1 %v759_v6 }
  0x2f   :  { %707 = vmatpush3.bf16.msra.mxu0 %v759_v6  ;;  %742 = vmatpush3.bf16.msra.mxu1 %v759_v6 }
  0x30   :  { %708 = vmatprep.subr.bf16.mxu0 %v760_v7  ;;  %735 = vmatprep.subr.bf16.mxu1 %v760_v7 }
  0x33   :  { %709 = vmatpush3.bf16.msra.mxu0 %v760_v7  ;;  %743 = vmatpush3.bf16.msra.mxu1 %v760_v7 }
  0x34   :  { %710 = vmatprep.subr.bf16.mxu0 %v761_v8  ;;  %736 = vmatprep.subr.bf16.mxu1 %v761_v8 }
  0x37   :  { %711 = vmatpush3.bf16.msra.mxu0 %v761_v8  ;;  %744 = vmatpush3.bf16.msra.mxu1 %v761_v8 }
  0x38   :  { %712 = vmatprep.subr.bf16.mxu0 %v762_v9  ;;  %737 = vmatprep.subr.bf16.mxu1 %v762_v9 }
  0x3b   :  { %713 = vmatpush3.bf16.msra.mxu0 %v762_v9  ;;  %745 = vmatpush3.bf16.msra.mxu1 %v762_v9 }
  0x3e   :  { %715 = vmatmul.mubr.bf16.vlgmr.msra.gmra.mxu0 %v765_v10  ;;  %723 = vmatmul.mubr.bf16.vlgmr.msra.gmra.mxu1 %v766_v11 }
  0x3f   :  { %718 = vmatprep.mubr.bf16.mxu0 %v767_v12  ;;  %726 = vmatprep.mubr.bf16.mxu1 %v769_v13 }
  0x46   :  { %719 = vmatmul.mubr.bf16.gmra.mxu0 %v768_v14  ;;  %727 = vmatmul.mubr.bf16.gmra.mxu1 %v770_v15 }
  0xfe   :  { %v716_v16 = vpop.f32.mrf.mxu0  ;;  %v724_v17 = vpop.f32.mrf.mxu1 }
  0xff   :  { %v483_v18 = vmul.f32 %v724_v17, %v724_v17  ;;  %v475_v19 = vmul.f32 %v716_v16, %v716_v16 }
 0x100   :  { %v263_v20 = vpop.f32.mrf.mxu0  ;;  %v295_v21 = vpop.f32.mrf.mxu1 }
 0x101   :  { %509 = vadd.xlane.f32.xlu0 %v483_v18  ;;  %493 = vadd.xlane.f32.xlu1 %v475_v19  ;;  %v473_v26 = vmul.f32 %v263_v20, %v263_v20  ;;  %v481_v34 = vmul.f32 %v295_v21, %v295_v21 }
 0x102   :  { %v717_v22 = vpop.f32.mrf.mxu0  ;;  %v725_v23 = vpop.f32.mrf.mxu1 }
 0x103   :  { %v643_v24 = vpack.c.bf16 %v717_v22, %v716_v16  ;;  %v663_v25 = vpack.c.bf16 %v725_v23, %v724_v17  ;;  %v476_v27 = vmul.f32 %v717_v22, %v717_v22  ;;  %v484_v35 = vmul.f32 %v725_v23, %v725_v23 }
 0x104   :  { %v266_v28 = vpop.f32.mrf.mxu0  ;;  %v298_v29 = vpop.f32.mrf.mxu1 }
 0x105   :  { %675 = vst [vmem:[#allocation8 + $0x8] sm:$0xff] %v643_v24   ;;  %679 = vst [vmem:[#allocation8 + $0x28] sm:$0xff] %v663_v25   ;;  %v638_v30 = vpack.c.bf16 %v266_v28, %v263_v20  ;;  %v658_v31 = vpack.c.bf16 %v298_v29, %v295_v21  ;;  %489 = vadd.xlane.f32.xlu0 %v473_v26  ;;  %495 = vadd.xlane.f32.xlu1 %v476_v27 }
 0x106   :  { %v720_v32 = vpop.f32.mrf.mxu0  ;;  %v728_v33 = vpop.f32.mrf.mxu1  ;;  %v482_v41 = vmul.f32 %v298_v29, %v298_v29  ;;  %v474_v42 = vmul.f32 %v266_v28, %v266_v28 }
 0x107   :  { %639 = vst [vmem:[#allocation8] sm:$0xff] %v638_v30   ;;  %678 = vst [vmem:[#allocation8 + $0x20] sm:$0xff] %v658_v31   ;;  %v479_v48 = vmul.f32 %v720_v32, %v720_v32  ;;  %v487_v54 = vmul.f32 %v728_v33, %v728_v33 }
 0x108   :  { %v279_v36 = vpop.f32.mrf.mxu0  ;;  %v311_v37 = vpop.f32.mrf.mxu1 }
 0x109   :  { %505 = vadd.xlane.f32.xlu0 %v481_v34  ;;  %511 = vadd.xlane.f32.xlu1 %v484_v35  ;;  %v477_v51 = vmul.f32 %v279_v36, %v279_v36  ;;  %v485_v53 = vmul.f32 %v311_v37, %v311_v37 }
 0x10a   :  { %v721_v38 = vpop.f32.mrf.mxu0  ;;  %v729_v39 = vpop.f32.mrf.mxu1 }
 0x10b   :  { %v653_v40 = vpack.c.bf16 %v721_v38, %v720_v32  ;;  %v673_v43 = vpack.c.bf16 %v729_v39, %v728_v33  ;;  %v480_v49 = vmul.f32 %v721_v38, %v721_v38  ;;  %v488_v55 = vmul.f32 %v729_v39, %v729_v39 }
 0x10c   :  { %v282_v44 = vpop.f32.mrf.mxu0  ;;  %v314_v45 = vpop.f32.mrf.mxu1 }
 0x10d   :  { %677 = vst [vmem:[#allocation8 + $0x18] sm:$0xff] %v653_v40   ;;  %v648_v46 = vpack.c.bf16 %v282_v44, %v279_v36  ;;  %507 = vadd.xlane.f32.xlu1 %v482_v41  ;;  %491 = vadd.xlane.f32.xlu0 %v474_v42  ;;  %681 = vst [vmem:[#allocation8 + $0x38] sm:$0xff] %v673_v43   ;;  %v668_v47 = vpack.c.bf16 %v314_v45, %v311_v37 }
 0x10e   :  { %v478_v50 = vmul.f32 %v282_v44, %v282_v44  ;;  %v486_v52 = vmul.f32 %v314_v45, %v314_v45 }
 0x10f   :  { %676 = vst [vmem:[#allocation8 + $0x10] sm:$0xff] %v648_v46   ;;  %680 = vst [vmem:[#allocation8 + $0x30] sm:$0xff] %v668_v47  }
 0x111   :  { %501 = vadd.xlane.f32.xlu0 %v479_v48  ;;  %503 = vadd.xlane.f32.xlu1 %v480_v49 }
 0x115   :  { %497 = vadd.xlane.f32.xlu0 %v477_v51  ;;  %499 = vadd.xlane.f32.xlu1 %v478_v50 }
 0x119   :  { %513 = vadd.xlane.f32.xlu0 %v485_v53  ;;  %515 = vadd.xlane.f32.xlu1 %v486_v52 }
 0x11d   :  { %517 = vadd.xlane.f32.xlu0 %v487_v54  ;;  %519 = vadd.xlane.f32.xlu1 %v488_v55 }
 0x11e   :  { %822 = shalt.err (!%p819_p0)
}
 0x11f   :  { %564 = dma.vmem_to_hbm [thread:$0]  %s559_s1, 1024, %s910_s2, [#allocation5], %s860_s15, %s860_s15, %s861_s16  }
 0x120   :  { %s864_s2 = smov [#allocation9]  }
 0x121   :  { %s570_s27 = sshll.u32 %s864_s2, 4  ;;  %s571_s27 = int_to_ptr.vmem [resolvable:$true] %s570_s27 }
 0x122   :  { %s831_s28 = scalar_lea.vmem %s571_s27, 2048  ;;  %p836_p2 = scmp.lt.s32.totalorder %s571_s27, %s571_s27 }
 0x123   :  { %p832_p1 = scmp.ne.s32.totalorder %s571_s27, %s831_s28  ;;  %p837_p3 = scmp.lt.s32.totalorder %s831_s28, %s831_s28 }
 0x125   :  { %p838_p4 = por %p837_p3, %p836_p2 }
 0x127   :  { %p839_p5 = pnand %p838_p4, %p832_p1 }
 0x18a   :  { %v510_v56 = vpop.xlane.xlu0 %509  ;;  %v494_v57 = vpop.xlane.xlu1 %493 }
 0x18b   :  { %547 = vst [vmem:[#allocation9 + $0x50] sm:$0xff] %v510_v56  ;;  %539 = vst [vmem:[#allocation9 + $0x10] sm:$0xff] %v494_v57 }
 0x18e   :  { %v490_v58 = vpop.xlane.xlu0 %489  ;;  %v496_v59 = vpop.xlane.xlu1 %495 }
 0x18f   :  { %537 = vst [vmem:[#allocation9] sm:$0xff] %v490_v58  ;;  %540 = vst [vmem:[#allocation9 + $0x18] sm:$0xff] %v496_v59 }
 0x192   :  { %v506_v60 = vpop.xlane.xlu0 %505  ;;  %v512_v61 = vpop.xlane.xlu1 %511 }
 0x193   :  { %545 = vst [vmem:[#allocation9 + $0x40] sm:$0xff] %v506_v60  ;;  %548 = vst [vmem:[#allocation9 + $0x58] sm:$0xff] %v512_v61 }
 0x196   :  { %v508_v62 = vpop.xlane.xlu1 %507  ;;  %v492_v63 = vpop.xlane.xlu0 %491 }
 0x197   :  { %546 = vst [vmem:[#allocation9 + $0x48] sm:$0xff] %v508_v62  ;;  %538 = vst [vmem:[#allocation9 + $0x8] sm:$0xff] %v492_v63 }
 0x19a   :  { %v502_v0 = vpop.xlane.xlu0 %501  ;;  %v504_v1 = vpop.xlane.xlu1 %503 }
 0x19b   :  { %543 = vst [vmem:[#allocation9 + $0x30] sm:$0xff] %v502_v0  ;;  %544 = vst [vmem:[#allocation9 + $0x38] sm:$0xff] %v504_v1 }
 0x19e   :  { %v498_v2 = vpop.xlane.xlu0 %497  ;;  %v500_v3 = vpop.xlane.xlu1 %499 }
 0x19f   :  { %541 = vst [vmem:[#allocation9 + $0x20] sm:$0xff] %v498_v2  ;;  %542 = vst [vmem:[#allocation9 + $0x28] sm:$0xff] %v500_v3 }
 0x1a2   :  { %v514_v4 = vpop.xlane.xlu0 %513  ;;  %v516_v5 = vpop.xlane.xlu1 %515 }
 0x1a3   :  { %549 = vst [vmem:[#allocation9 + $0x60] sm:$0xff] %v514_v4  ;;  %550 = vst [vmem:[#allocation9 + $0x68] sm:$0xff] %v516_v5 }
 0x1a6   :  { %v518_v6 = vpop.xlane.xlu0 %517  ;;  %v520_v7 = vpop.xlane.xlu1 %519 }
 0x1a7   :  { %551 = vst [vmem:[#allocation9 + $0x70] sm:$0xff] %v518_v6  ;;  %552 = vst [vmem:[#allocation9 + $0x78] sm:$0xff] %v520_v7 }
 0x1a8   :  { %842 = shalt.err (!%p839_p5)
}
 0x1a9   :  { %s865_s29 = smov 128   ;;  %s866_s30 = smov 8  }
 0x1aa   :  { %576 = dma.vmem_to_hbm [thread:$0]  %s571_s27, 2048, %s911_s3, [#allocation10], %s865_s29, %s865_s29, %s866_s30  }
 0x1ab   :  { %855 = dma.done.wait [#allocation5], 1024  }
 0x1ac   :  { %856 = vsyncadd [#allocation5], 4294966272 }
 0x1ad   :  { %857 = dma.done.wait [#allocation10], 2048  }
 0x1ae   :  { %858 = vsyncadd [#allocation10], 4294965248 }
 0x1af   :  { %583 = vsyncpa [#allocation4], 1 }
 0x1b0   :  { %584 = vsyncpa [#allocation7], 1 }
 0x1b1   :  { %585 = vsyncpa [#allocation5], 1 }
 0x1b2   :  { %586 = vsyncpa [#allocation10], 1 }

</bundles_post_ra>
